<compile_context>
chip_gen: v7x
topology: tpu7x:2x2x1
jax: 0.10.0
libtpu: 0.0.40
codegen_flags: <defaults>
</compile_context>

<pallas_src>
import functools

import numpy as np
import jax
import jax.numpy as jnp
from jax import lax
from jax.experimental import pallas as pl
from jax.experimental.pallas import tpu as pltpu

EPS = 1e-6
_LANE = 128
_TARGET_BYTES = 2 * 1024 * 1024   # per operand per block


def _round_up(x, a):
    return (x + a - 1) // a * a


def _cdiv(a, b):
    return (a + b - 1) // b


@functools.lru_cache(maxsize=None)
def _vmem_limit_bytes():
    """Generation-aware VMEM budget: ~3/4 of physical, capped at 96 MiB."""
    cap = 128 * 1024 * 1024
    try:
        cap = int(getattr(pltpu.get_tpu_info(), "vmem_capacity_bytes", cap))
    except Exception:
        pass
    return max(32 * 1024 * 1024, min(3 * cap // 4, 96 * 1024 * 1024))


def _pick_subrow_split(R, S, m):
    """If N*C is too small to give the parallel row axis >= 2 tiles (v7x has two
    TensorCores), split each row into k sub-rows via a free reshape."""
    if R >= 2 * m:
        return 1
    for k in (2, 4, 8, 16):
        if S % k == 0 and R * k >= 2 * m and (S // k) >= _LANE:
            return k
    return 1


def _dice_bce_kernel(yp_ref, yt_ref, out_ref, *, tr, ts, valid_rows, valid_cols,
                     mask_rows, mask_cols, binary_targets):
    """Grid = (row tiles [parallel], spatial tiles [reduction, last]).

    out_ref is a (3, tr, 128) f32 block that stays resident across the spatial
    axis; it holds per-row lane-partial accumulators for (intersection, union, bce).
    """
    i = pl.program_id(0)
    j = pl.program_id(1)

    @pl.when(j == 0)
    def _():
        out_ref[...] = jnp.zeros_like(out_ref)

    yp = yp_ref[...].astype(jnp.float32)
    yt = yt_ref[...].astype(jnp.float32)

    # Ragged tails handled in-kernel (no wrapper-side pad): zero out-of-range
    # lanes/rows so they contribute exactly 0 to intersection, union and BCE.
    if mask_cols:
        col_ok = (lax.broadcasted_iota(jnp.int32, (1, ts), 1) + j * ts) < valid_cols
        yp = jnp.where(col_ok, yp, 0.0)
        yt = jnp.where(col_ok, yt, 0.0)
    if mask_rows:
        row_ok = (lax.broadcasted_iota(jnp.int32, (tr, 1), 0) + i * tr) < valid_rows
        yp = jnp.where(row_ok, yp, 0.0)
        yt = jnp.where(row_ok, yt, 0.0)

    prod = yp * yt
    tot = yp + yt

    if binary_targets:
        # One EUP log/element (only valid for hard {0,1} labels).
        p = jnp.where(yt > 0.5, yp, 1.0 - yp)
        bce = -jnp.maximum(jnp.log(p), -100.0)
    else:
        # PyTorch F.binary_cross_entropy clamps log at -100 (avoids 0 * -inf).
        log_p = jnp.maximum(jnp.log(yp), -100.0)
        log_1mp = jnp.maximum(jnp.log(1.0 - yp), -100.0)
        bce = -(yt * log_p + (1.0 - yt) * log_1mp)

    # Lane-partial accumulation: plain VPU adds over 128-lane groups; the single
    # cross-lane (XLU) reduce happens once in the tiny JAX epilogue.
    inter_p = out_ref[0]
    union_p = out_ref[1]
    bce_p = out_ref[2]
    for g in range(ts // _LANE):
        sl = slice(g * _LANE, (g + 1) * _LANE)
        inter_p = inter_p + prod[:, sl]
        union_p = union_p + tot[:, sl]
        bce_p = bce_p + bce[:, sl]
    out_ref[0] = inter_p
    out_ref[1] = union_p
    out_ref[2] = bce_p


@functools.partial(jax.jit, static_argnames=("assume_binary_targets",))
def dice_bce_loss(y_pred, y_true, *, assume_binary_targets=False):
    """Pallas implementation of DiceBCELoss.forward (weight=None)."""
    assert y_pred.shape == y_true.shape
    shape = y_pred.shape
    R = int(shape[0] * shape[1])                          # per-(N, C) rows
    S = int(np.prod(shape[2:])) if len(shape) > 2 else 1  # spatial extent

    itemsize = jnp.dtype(y_pred.dtype).itemsize
    # Sublane packing multiple for the input dtype: f32 -> 8, bf16 -> 16, int8 -> 32.
    m = {4: 8, 2: 16, 1: 32}.get(itemsize, 8)

    # Free sub-row split so the parallel axis can feed both v7x TensorCores.
    k = _pick_subrow_split(R, S, m)
    R_rows, S2 = R * k, S // k

    yp = y_pred.reshape(R_rows, S2)
    yt = y_true.reshape(R_rows, S2)

    # Blocks sized by bytes of the *input dtype* (~2 MiB per operand per block).
    target_elems = max(_LANE * m, _TARGET_BYTES // itemsize)

    ts_cap = max(_LANE, (target_elems // m) // _LANE * _LANE)
    ts = min(_round_up(S2, _LANE), ts_cap)          # spatial tile, multiple of 128
    num_j = _cdiv(S2, ts)

    tr_cap = max(m, (target_elems // ts) // m * m)
    tr = min(_round_up(R_rows, m), tr_cap)          # row tile, multiple of m
    num_i = _cdiv(R_rows, tr)
    if num_i < 2 and R_rows > m:
        # Ensure >= 2 parallel row tiles (v7x megacore); harmless on v5e/v6e.
        tr = _round_up(_cdiv(R_rows, 2), m)
        num_i = _cdiv(R_rows, tr)

    r_pad = num_i * tr
    mask_rows = (R_rows % tr) != 0
    mask_cols = (S2 % ts) != 0

    kernel = functools.partial(
        _dice_bce_kernel, tr=tr, ts=ts, valid_rows=R_rows, valid_cols=S2,
        mask_rows=mask_rows, mask_cols=mask_cols,
        binary_targets=assume_binary_targets)

    cost = pl.CostEstimate(
        flops=10 * R * S,
        transcendentals=(1 if assume_binary_targets else 2) * R * S,
        bytes_accessed=2 * R * S * itemsize + 3 * r_pad * _LANE * 4)

    stats = pl.pallas_call(
        kernel,
        out_shape=jax.ShapeDtypeStruct((3, r_pad, _LANE), jnp.float32),
        grid_spec=pltpu.PrefetchScalarGridSpec(
            num_scalar_prefetch=0,
            grid=(num_i, num_j),
            in_specs=[
                pl.BlockSpec((tr, ts), lambda i, j: (i, j)),
                pl.BlockSpec((tr, ts), lambda i, j: (i, j)),
            ],
            out_specs=pl.BlockSpec((3, tr, _LANE), lambda i, j: (0, i, 0)),
        ),
        compiler_params=pltpu.CompilerParams(
            dimension_semantics=("parallel", "arbitrary"),
            vmem_limit_bytes=_vmem_limit_bytes(),
        ),
        cost_estimate=cost,
    )(yp, yt)

    # Tiny epilogue in plain JAX: one cross-lane reduce + the dice/bce means.
    stats = stats[:, :R_rows, :]
    inter = jnp.sum(stats[0], axis=-1)
    union = jnp.sum(stats[1], axis=-1)
    bce_total = jnp.sum(stats[2])
    if k > 1:  # undo the sub-row split
        inter = jnp.sum(inter.reshape(R, k), axis=1)
        union = jnp.sum(union.reshape(R, k), axis=1)
    dice_mean = jnp.mean((2.0 * inter + EPS) / (union + EPS))
    bce_mean = bce_total / jnp.float32(R * S)
    return bce_mean + (1.0 - dice_mean)


def _reference(y_pred, y_true):
    yp = y_pred.astype(jnp.float32)
    yt = y_true.astype(jnp.float32)
    dims = tuple(range(2, y_pred.ndim))
    inter = jnp.sum(yp * yt, axis=dims)
    union = jnp.sum(yp + yt, axis=dims)
    dice = jnp.mean((2.0 * inter + EPS) / (union + EPS))
    log_p = jnp.maximum(jnp.log(yp), -100.0)
    log_1mp = jnp.maximum(jnp.log(1.0 - yp), -100.0)
    bce = jnp.mean(-(yt * log_p + (1.0 - yt) * log_1mp))
    return bce + (1.0 - dice)


if __name__ == "__main__":
    key = jax.random.PRNGKey(0)
    k1, k2 = jax.random.split(key)
    N, C, H, W = 2, 4, 16, 16
    # y_pred: probabilities in (0, 1); y_true: binary mask.
    y_pred = jax.nn.sigmoid(jax.random.normal(k1, (N, C, H, W), jnp.float32))
    y_true = (jax.random.uniform(k2, (N, C, H, W)) > 0.5).astype(jnp.float32)

    ref = _reference(y_pred, y_true)

    loss = dice_bce_loss(y_pred, y_true)
    jax.block_until_ready(loss)
    np.testing.assert_allclose(np.asarray(loss), np.asarray(ref), rtol=1e-5, atol=1e-5)

    # Binary-target fast path (one log instead of two): identical for {0,1} masks.
    loss_bin = dice_bce_loss(y_pred, y_true, assume_binary_targets=True)
    jax.block_until_ready(loss_bin)
    np.testing.assert_allclose(np.asarray(loss_bin), np.asarray(ref), rtol=1e-5, atol=1e-5)

    # Ragged shape exercising the in-kernel tail masking (no wrapper-side pad).
    k3, k4 = jax.random.split(k2)
    y_pred2 = jax.nn.sigmoid(jax.random.normal(k3, (2, 3, 13, 17), jnp.float32))
    y_true2 = (jax.random.uniform(k4, (2, 3, 13, 17)) > 0.5).astype(jnp.float32)
    loss2 = dice_bce_loss(y_pred2, y_true2)
    jax.block_until_ready(loss2)
    ref2 = _reference(y_pred2, y_true2)
    np.testing.assert_allclose(np.asarray(loss2), np.asarray(ref2), rtol=1e-5, atol=1e-5)

    print("KERNEL_OK")
</pallas_src>

<mosaic_0001>
module attributes {stable_mosaic.version = 11 : i64} {
  func.func @_dice_bce_kernel(%arg0: i32, %arg1: i32, %arg2: memref<8x128xf32, #tpu.memory_space<vmem>>, %arg3: memref<8x128xf32, #tpu.memory_space<vmem>>, %arg4: memref<3x8x128xf32, #tpu.memory_space<vmem>>) attributes {dimension_semantics = [#tpu.dimension_semantics<parallel>, #tpu.dimension_semantics<arbitrary>], iteration_bounds = array<i64: 2, 1>, scalar_prefetch = 0 : i64, scratch_operands = 0 : i64, tpu.core_type = #tpu.core_type<tc>, window_params = [{transform_indices = @transform_0, window_bounds = array<i64: 8, 128>}, {transform_indices = @transform_1, window_bounds = array<i64: 8, 128>}, {transform_indices = @transform_2, window_bounds = array<i64: 3, 8, 128>}]} {
    %c0_i32 = arith.constant 0 : i32
    %0 = arith.cmpi eq, %arg1, %c0_i32 : i32
    %1 = arith.extui %0 : i1 to i32
    %c0_i32_0 = arith.constant 0 : i32
    %2 = arith.cmpi ne, %1, %c0_i32_0 : i32
    scf.if %2 {
      %cst_24 = arith.constant 0.000000e+00 : f32
      %40 = vector.broadcast %cst_24 : f32 to vector<3x8x128xf32>
      %c0_25 = arith.constant 0 : index
      %c0_26 = arith.constant 0 : index
      %c0_27 = arith.constant 0 : index
      %41 = vector.load %arg4[%c0_25, %c0_26, %c0_27] : memref<3x8x128xf32, #tpu.memory_space<vmem>>, vector<3x8x128xf32>
      tpu.vector_store %arg4[%c0_25, %c0_26, %c0_27], %40 {strides = array<i32>} : memref<3x8x128xf32, #tpu.memory_space<vmem>>, vector<3x8x128xf32>,
    } else {
    }
    %c0 = arith.constant 0 : index
    %c0_1 = arith.constant 0 : index
    %3 = vector.load %arg2[%c0, %c0_1] : memref<8x128xf32, #tpu.memory_space<vmem>>, vector<8x128xf32>
    %c0_2 = arith.constant 0 : index
    %c0_3 = arith.constant 0 : index
    %4 = vector.load %arg3[%c0_2, %c0_3] : memref<8x128xf32, #tpu.memory_space<vmem>>, vector<8x128xf32>
    %5 = arith.mulf %3, %4 : vector<8x128xf32>
    %6 = arith.addf %3, %4 : vector<8x128xf32>
    %7 = math.log %3 : vector<8x128xf32>
    %cst = arith.constant -1.000000e+02 : f32
    %8 = vector.broadcast %cst : f32 to vector<8x128xf32>
    %9 = arith.maximumf %7, %8 : vector<8x128xf32>
    %cst_4 = arith.constant 1.000000e+00 : f32
    %10 = vector.broadcast %cst_4 : f32 to vector<8x128xf32>
    %11 = arith.subf %10, %3 : vector<8x128xf32>
    %12 = math.log %11 : vector<8x128xf32>
    %cst_5 = arith.constant -1.000000e+02 : f32
    %13 = vector.broadcast %cst_5 : f32 to vector<8x128xf32>
    %14 = arith.maximumf %12, %13 : vector<8x128xf32>
    %15 = arith.mulf %4, %9 : vector<8x128xf32>
    %cst_6 = arith.constant 1.000000e+00 : f32
    %16 = vector.broadcast %cst_6 : f32 to vector<8x128xf32>
    %17 = arith.subf %16, %4 : vector<8x128xf32>
    %18 = arith.mulf %17, %14 : vector<8x128xf32>
    %19 = arith.addf %15, %18 : vector<8x128xf32>
    %cst_7 = arith.constant 0.000000e+00 : f32
    %20 = vector.broadcast %cst_7 : f32 to vector<8x128xf32>
    %21 = arith.subf %20, %19 : vector<8x128xf32>
    %c0_8 = arith.constant 0 : index
    %c0_9 = arith.constant 0 : index
    %c0_10 = arith.constant 0 : index
    %22 = vector.load %arg4[%c0_8, %c0_9, %c0_10] : memref<3x8x128xf32, #tpu.memory_space<vmem>>, vector<1x8x128xf32>
    %23 = vector.shape_cast %22 : vector<1x8x128xf32> to vector<8x128xf32>
    %c1 = arith.constant 1 : index
    %c0_11 = arith.constant 0 : index
    %c0_12 = arith.constant 0 : index
    %24 = vector.load %arg4[%c1, %c0_11, %c0_12] : memref<3x8x128xf32, #tpu.memory_space<vmem>>, vector<1x8x128xf32>
    %25 = vector.shape_cast %24 : vector<1x8x128xf32> to vector<8x128xf32>
    %c2 = arith.constant 2 : index
    %c0_13 = arith.constant 0 : index
    %c0_14 = arith.constant 0 : index
    %26 = vector.load %arg4[%c2, %c0_13, %c0_14] : memref<3x8x128xf32, #tpu.memory_space<vmem>>, vector<1x8x128xf32>
    %27 = vector.shape_cast %26 : vector<1x8x128xf32> to vector<8x128xf32>
    %28 = arith.addf %23, %5 : vector<8x128xf32>
    %29 = arith.addf %25, %6 : vector<8x128xf32>
    %30 = arith.addf %27, %21 : vector<8x128xf32>
    %c0_15 = arith.constant 0 : index
    %c0_16 = arith.constant 0 : index
    %c0_17 = arith.constant 0 : index
    %31 = vector.load %arg4[%c0_15, %c0_16, %c0_17] : memref<3x8x128xf32, #tpu.memory_space<vmem>>, vector<1x8x128xf32>
    %32 = vector.shape_cast %31 : vector<1x8x128xf32> to vector<8x128xf32>
    %33 = vector.shape_cast %28 : vector<8x128xf32> to vector<1x8x128xf32>
    tpu.vector_store %arg4[%c0_15, %c0_16, %c0_17], %33 {strides = array<i32>} : memref<3x8x128xf32, #tpu.memory_space<vmem>>, vector<1x8x128xf32>,
    %c1_18 = arith.constant 1 : index
    %c0_19 = arith.constant 0 : index
    %c0_20 = arith.constant 0 : index
    %34 = vector.load %arg4[%c1_18, %c0_19, %c0_20] : memref<3x8x128xf32, #tpu.memory_space<vmem>>, vector<1x8x128xf32>
    %35 = vector.shape_cast %34 : vector<1x8x128xf32> to vector<8x128xf32>
    %36 = vector.shape_cast %29 : vector<8x128xf32> to vector<1x8x128xf32>
    tpu.vector_store %arg4[%c1_18, %c0_19, %c0_20], %36 {strides = array<i32>} : memref<3x8x128xf32, #tpu.memory_space<vmem>>, vector<1x8x128xf32>,
    %c2_21 = arith.constant 2 : index
    %c0_22 = arith.constant 0 : index
    %c0_23 = arith.constant 0 : index
    %37 = vector.load %arg4[%c2_21, %c0_22, %c0_23] : memref<3x8x128xf32, #tpu.memory_space<vmem>>, vector<1x8x128xf32>
    %38 = vector.shape_cast %37 : vector<1x8x128xf32> to vector<8x128xf32>
    %39 = vector.shape_cast %30 : vector<8x128xf32> to vector<1x8x128xf32>
    tpu.vector_store %arg4[%c2_21, %c0_22, %c0_23], %39 {strides = array<i32>} : memref<3x8x128xf32, #tpu.memory_space<vmem>>, vector<1x8x128xf32>,
    return
  }
  func.func @transform_0(%arg0: i32, %arg1: i32) -> (i32, i32) {
    %c0_i32 = arith.constant 0 : i32
    return %arg0, %arg1 : i32, i32
  }
  func.func @transform_1(%arg0: i32, %arg1: i32) -> (i32, i32) {
    %c0_i32 = arith.constant 0 : i32
    return %arg0, %arg1 : i32, i32
  }
  func.func @transform_2(%arg0: i32, %arg1: i32) -> (i32, i32, i32) {
    %c0_i32 = arith.constant 0 : i32
    %c0_i32_0 = arith.constant 0 : i32
    %c0_i32_1 = arith.constant 0 : i32
    return %c0_i32, %arg0, %c0_i32_0 : i32, i32, i32
  }
}

</mosaic_0001>

<bundles_post_ra>
// kernel: dice_bce_loss.1
= control target key start
LH: loop header
LB: loop body
LE: loop exit
PB: predicated region body
PF: predicated region fallthrough
CT: control target
= control target key end

     0   :  { %7 = vsyncpa [#allocation3], 0  ;;  %s853_s0 = inlined_call_operand.hbm [shape: f32[16,128], index: 0, kind: input, shape index: {}]   ;;  %s854_s1 = inlined_call_operand.hbm [shape: f32[16,128], index: 1, kind: input, shape index: {}]   ;;  %s855_s2 = inlined_call_operand.hbm [shape: f32[3,16,128], index: 2, kind: output, shape index: {}]  }
   0x1   :  { %9 = vsyncpa [#allocation3 + $0x1], 0 }
   0x2   :  { %10 = vsyncpa [#allocation6], 0 }
   0x3   :  { %12 = vsyncpa [#allocation6 + $0x1], 0 }
   0x4   :  { %13 = vsyncpa [#allocation4], 0 }
   0x5   :  { %15 = vsyncpa [#allocation4 + $0x1], 0  ;;  %s630_s9 = smov 0   ;;  %s632_s10 = smov 0  }
   0x6   :  { %s634_s11 = smov 0   ;;  %s636_s12 = smov 0  }
   0x7   :  { %s638_s13 = smov 0   ;;  %s640_s14 = smov 0  }
   0x8 LB: > { %s367_s15 = sadd.s32 4294967295, %s607_s14   ;;  %s368_s16 = sadd.s32 4294967294, %s607_s14   ;;  %s607_s14 = sphi %s640_s14, %s21_s14   ;;  %s603_s13 = sphi %s638_s13, %s875_s13   ;;  %s599_s12 = sphi %s636_s12, %s874_s12   ;;  %s595_s11 = sphi %s634_s11, %s873_s11   ;;  %s591_s10 = sphi %s632_s10, %s872_s10   ;;  %s587_s9 = sphi %s630_s9, %s871_s9  }
   0x9   : > { %s33_s17 = sadd.s32 1, %s603_s13  ;;  %s42_s18 = sadd.s32 1, %s595_s11 }
   0xa   : > { %p35_p0 = scmp.ge.s32.totalorder %s33_s17, 2  ;;  %p49_p1 = scmp.ne.s32.totalorder %s595_s11, %s591_s10 }
   0xb   : > { %p50_p2 = scmp.eq.s32.totalorder %s607_s14, 0  ;;  %p55_p3 = scmp.ne.s32.totalorder %s591_s10, %s587_s9 }
   0xc   : > { %s877_s17 = smov (%p35_p0, %s33_s17), 0  ;;  %p56_p5 = scmp.eq.s32.totalorder %s367_s15, 0 }
   0xd   : > { %p671_p4 = por %p50_p2, %p49_p1  ;;  %s37_s20 = ssub.s32 %s603_s13, %s877_s17 }
   0xe   : > { %p107_p6 = scmp.eq.s32.totalorder %s367_s15, 1  ;;  %p40_p7 = scmp.eq.s32.totalorder %s37_s20, 0 }
   0xf   : > { %p677_p8 = por %p56_p5, %p55_p3  ;;  %p113_p10 = scmp.eq.s32.totalorder %s368_s16, 1 }
  0x10   : > { %p681_p9 = por %p107_p6, %p49_p1  ;;  %p403_p13 = scmp.lt.s32.totalorder %s607_s14, 2 }
  0x11   : > { %s859_s21 = scalar_select %p677_p8, 1, 0 }
  0x12   : > { %s860_s22 = scalar_select %p681_p9, 1, 0 }
  0x13   : > { %s686_s23 = scalar_select %p40_p7, %s595_s11, %s42_s18  }
  0x14   : > { %p688_p11 = por %p113_p10, %p55_p3  ;;  %s695_s25 = sand.u32 1, %s595_s11  }
  0x15   : > { %s371_s26 = sshll.u32 %s695_s25, 3  ;;  %s372_s27 = sshll.u32 %s603_s13, 7 }
  0x16   : > { %s861_s24 = scalar_select %p688_p11, 1, 0 }
  0x17   : > { %s704_s30 = scalar_lea.hbm %s853_s0, %s372_s27  ;;  %s137_s3 = scalar_lea.vmem [#allocation2], %s371_s26 }
  0x18   : > { %s145_s4 = sshll.u32 %s137_s3, 4  ;;  %p712_p0 = pnand %p403_p13, %p671_p4  ;;  %s708_s4 = int_to_ptr.vmem [resolvable:$true] %s145_s4 }
  0x19   : > { %s134_s6 = scalar_lea.sflag [#allocation3], %s695_s25  ;;  %s461_s7 = scalar_lea.hbm %s704_s30, 128 }
  0x1a   : > { %p462_p3 = scmp.ne.s32.totalorder %s704_s30, %s461_s7  ;;  %p463_p5 = pneg %p712_p0 }
  0x1b   : > { %s466_s16 = scalar_lea.hbm %s853_s0, 256  ;;  %p467_p4 = scmp.lt.u32.totalorder %s704_s30, %s853_s0 }
  0x1c   : > { %p464_p6 = pnand %p463_p5, %p462_p3  ;;  %p468_p10 = scmp.lt.u32.totalorder %s466_s16, %s461_s7 }
  0x1d   : > { %p470_p12 = scmp.lt.u32.totalorder %s461_s7, %s704_s30 }
  0x1e   : > { %p465_p7 = pneg %p464_p6  ;;  %p469_p13 = por %p468_p10, %p467_p4 }
  0x20   : > { %p471_p1 = por %p470_p12, %p469_p13 }
  0x22   : > { %p472_p2 = pnand %p471_p1, %p465_p7 }
  0x24   : > { %475 = shalt.err (!%p472_p2)
}
  0x25   : > { %s476_s20 = scalar_lea.vmem %s708_s4, 128  ;;  %s609_s28 = smov [#allocation2]  }
  0x26   : > { %p477_p3 = scmp.ne.s32.totalorder %s708_s4, %s476_s20  ;;  %s481_s29 = sshll.u32 %s609_s28, 4  ;;  %s482_s29 = int_to_ptr.vmem [resolvable:$false] %s481_s29 }
  0x27   : > { %s483_s3 = scalar_lea.vmem %s482_s29, 256  ;;  %p484_p9 = scmp.lt.s32.totalorder %s708_s4, %s482_s29 }
  0x28   : > { %p479_p6 = pnand %p477_p3, %p463_p5  ;;  %p485_p4 = scmp.lt.s32.totalorder %s483_s3, %s476_s20 }
  0x2a   : > { %p480_p11 = pneg %p479_p6  ;;  %p486_p10 = por %p485_p4, %p484_p9 }
  0x2c   : > { %p487_p12 = pnand %p486_p10, %p480_p11 }
  0x2e   : > { %490 = shalt.err (!%p487_p12)
}
  0x2f   : > { %395 = dma.hbm_to_vmem [thread:$0]  (!%p712_p0), %s704_s30, 128, %s708_s4, %s134_s6  }
  0x30   : > { %p863_p1 = scmp.lt.s32.totalorder %s607_s14, 3  ;;  %p864_p2 = scmp.ge.s32.totalorder %s607_s14, 1 }
  0x31   : > { %s757_s16 = scalar_lea.hbm %s854_s1, %s372_s27  ;;  %s156_s18 = scalar_lea.vmem [#allocation5], %s371_s26 }
  0x32   : > { %p748_p7 = pnand %p864_p2, %p863_p1  ;;  %s164_s19 = sshll.u32 %s156_s18, 4  ;;  %s165_s19 = int_to_ptr.vmem [resolvable:$true] %s164_s19 }
  0x33   : > { %s153_s30 = scalar_lea.sflag [#allocation6], %s695_s25  ;;  %s491_s4 = scalar_lea.hbm %s757_s16, 128 }
  0x34   : > { %s865_s7 = scalar_select %p748_p7, 1, 0 }
  0x35   : > { %p492_p9 = scmp.ne.s32.totalorder %s757_s16, %s491_s4  ;;  %s496_s27 = scalar_lea.hbm %s854_s1, 256 }
  0x36   : > { %p497_p3 = scmp.lt.u32.totalorder %s757_s16, %s854_s1  ;;  %p498_p6 = scmp.lt.u32.totalorder %s496_s27, %s491_s4 }
  0x37   : > { %p494_p11 = pnand %p492_p9, %p463_p5  ;;  %p500_p10 = scmp.lt.u32.totalorder %s491_s4, %s757_s16 }
  0x38   : > { %p499_p4 = por %p498_p6, %p497_p3 }
  0x39   : > { %p495_p13 = pneg %p494_p11 }
  0x3a   : > { %p501_p12 = por %p500_p10, %p499_p4 }
  0x3c   : > { %p502_p1 = pnand %p501_p12, %p495_p13 }
  0x3e   : > { %505 = shalt.err (!%p502_p1)
}
  0x3f   : > { %s506_s25 = scalar_lea.vmem %s165_s19, 128  ;;  %s610_s26 = smov [#allocation5]  }
  0x40   : > { %p507_p2 = scmp.ne.s32.totalorder %s165_s19, %s506_s25  ;;  %s511_s3 = sshll.u32 %s610_s26, 4  ;;  %s512_s3 = int_to_ptr.vmem [resolvable:$false] %s511_s3 }
  0x41   : > { %s513_s8 = scalar_lea.vmem %s512_s3, 256  ;;  %p514_p8 = scmp.lt.s32.totalorder %s165_s19, %s512_s3 }
  0x42   : > { %p509_p9 = pnand %p507_p2, %p463_p5  ;;  %p515_p7 = scmp.lt.s32.totalorder %s513_s8, %s506_s25 }
  0x44   : > { %p510_p11 = pneg %p509_p9  ;;  %p516_p3 = por %p515_p7, %p514_p8 }
  0x46   : > { %p517_p6 = pnand %p516_p3, %p510_p11 }
  0x48   : > { %520 = shalt.err (!%p517_p6)
}
  0x49   : > { %398 = dma.hbm_to_vmem [thread:$0]  (!%p712_p0), %s757_s16, 128, %s165_s19, %s153_s30  }
  0x4a   : > { %p866_p13 = scmp.ne.s32.totalorder %s865_s7, 0 }
  0x4b   : > { %s784_s15 = sand.u32 (!%p866_p13), 1, %s591_s10   ;;  %p867_p5 = scmp.ne.s32.totalorder (!%p866_p13), %s859_s21, 0 }
  0x4c   : > { %173 = sbr.rel (%p866_p13) target bundleno = 126 (0x7e), region = 28  ;;  %s376_s18 = sshll.u32 (!%p866_p13), %s784_s15, 3 }
  0x4d   : > { %s176_s4 = scalar_lea.sflag (!%p866_p13), [#allocation3], %s784_s15  ;;  %s179_s6 = scalar_lea.vmem (!%p866_p13), [#allocation2], %s376_s18 }
  0x53   : > { %574 = dma.done.wait (%p867_p5), %s176_s4, 128  }
  0x54   : > { %576 = vsyncadd (%p867_p5), %s176_s4, 4294967168  ;;  %s185_s5 = scalar_lea.sflag [#allocation6], %s784_s15  ;;  %s188_s16 = scalar_lea.vmem [#allocation5], %s376_s18 }
  0x55   : > { %578 = dma.done.wait (%p867_p5), %s185_s5, 128  }
  0x56   : > { %580 = vsyncadd (%p867_p5), %s185_s5, 4294967168  ;;  %s385_s7 = smul.u32 24, %s784_s15  ;;  %v221_v0 = vld [vmem:[%s179_s6] sm:$0xff]  ;;  %v222_v1 = vld [vmem:[%s188_s16] sm:$0xff]  ;;  %s382_s21 = sshll.u32 %s599_s12, 7 }
  0x57   : > { %v223_v2 = vmul.f32 %v222_v1, %v221_v0  ;;  %v228_v3 = vsub.f32 1.0, %v221_v0  ;;  %v224_v4 = vadd.f32 %v222_v1, %v221_v0  ;;  %457 = vlog2.f32 %v221_v0  ;;  %s802_s28 = scalar_lea.hbm %s855_s2, %s382_s21  ;;  %s249_s29 = scalar_lea.sflag [#allocation4], %s784_s15 }
  0x58   : > { %s213_s19 = scalar_lea.vmem [#allocation7], %s385_s7  ;;  %v233_v10 = vsub.f32 1.0, %v222_v1  ;;  %p868_p0 = scmp.ne.s32.totalorder %s860_s22, 0 }
  0x59   : > { %459 = vlog2.f32 %v228_v3  ;;  %245 = vst [vmem:[%s213_s19] sm:$0xff] %v223_v2  ;;  %380 = vst [vmem:[%s213_s19 + $0x8] sm:$0xff] %v224_v4  ;;  %s261_s30 = sshll.u32 %s213_s19, 4  ;;  %s611_s12 = smov [#allocation7]   ;;  %s804_s30 = int_to_ptr.vmem [resolvable:$true] %s261_s30 }
  0x5a   : > { %s521_s25 = scalar_lea.vmem %s804_s30, 384  ;;  %s525_s26 = sshll.u32 %s611_s12, 4  ;;  %s526_s26 = int_to_ptr.vmem [resolvable:$false] %s525_s26 }
  0x5b   : > { %p522_p8 = scmp.ne.s32.totalorder %s804_s30, %s521_s25  ;;  %s527_s3 = scalar_lea.vmem %s526_s26, 768 }
  0x5c   : > { %p528_p10 = scmp.lt.s32.totalorder %s804_s30, %s526_s26  ;;  %p529_p12 = scmp.lt.s32.totalorder %s527_s3, %s521_s25 }
  0x5d   : > { %p523_p7 = pnand %p522_p8, %p868_p0 }
  0x5e   : > { %p530_p1 = por %p529_p12, %p528_p10 }
  0x5f   : > { %p524_p4 = pneg %p523_p7 }
  0x61   : > { %v458_v5 = vpop.eup %457  ;;  %p531_p2 = pnand %p530_p1, %p524_p4 }
  0x62   : > { %v226_v6 = vmul.f32 0.6931472, %v458_v5 }
  0x63   : > { %v460_v7 = vpop.eup %459 }
  0x64   : > { %v227_v8 = vmax.f32 %v226_v6, -100.0  ;;  %v230_v9 = vmul.f32 0.6931472, %v460_v7 }
  0x66   : > { %v231_v11 = vmax.f32 %v230_v9, -100.0  ;;  %v232_v12 = vmul.f32 %v227_v8, %v222_v1 }
  0x68   : > { %v234_v13 = vmul.f32 %v233_v10, %v231_v11 }
  0x6a   : > { %v235_v14 = vadd.f32 %v234_v13, %v232_v12 }
  0x6c   : > { %v236_v15 = vsub.f32 0.0, %v235_v14 }
  0x6e   : > { %381 = vst [vmem:[%s213_s19 + $0x10] sm:$0xff] %v236_v15 }
  0x6f   : > { %534 = shalt.err (!%p531_p2)
}
  0x70   : > { %s535_s8 = scalar_lea.hbm %s802_s28, 384  ;;  %s539_s6 = scalar_lea.hbm %s855_s2, 768 }
  0x71   : > { %p536_p9 = scmp.ne.s32.totalorder %s802_s28, %s535_s8  ;;  %p540_p6 = scmp.lt.u32.totalorder %s802_s28, %s855_s2 }
  0x72   : > { %p541_p13 = scmp.lt.u32.totalorder %s539_s6, %s535_s8  ;;  %p543_p8 = scmp.lt.u32.totalorder %s535_s8, %s802_s28 }
  0x73   : > { %p537_p11 = pnand %p536_p9, %p868_p0 }
  0x74   : > { %p542_p5 = por %p541_p13, %p540_p6 }
  0x75   : > { %p538_p3 = pneg %p537_p11 }
  0x76   : > { %p544_p7 = por %p543_p8, %p542_p5 }
  0x78   : > { %p545_p4 = pnand %p544_p7, %p538_p3 }
  0x7a   : > { %548 = shalt.err (!%p545_p4)
}
  0x7b   : > { %s612_s7 = smov 128   ;;  %s613_s19 = smov 256  }
  0x7c   : > { %s614_s21 = smov 8  }
  0x7d   : > { %390 = dma.vmem_to_hbm [thread:$0]  (%p868_p0), %s804_s30, 384, %s802_s28, %s249_s29, %s612_s7, %s613_s19, %s614_s21  }
  0x7e PF: > { %s276_s20 = sand.u32 1, %s587_s9   ;;  %p869_p10 = scmp.ne.s32.totalorder %s861_s24, 0 }
  0x7f   : > { %p870_p12 = scmp.ge.s32.totalorder %s607_s14, 2  ;;  %s277_s27 = scalar_lea.sflag [#allocation4], %s276_s20 }
  0x81   : > { %p400_p1 = pnand %p870_p12, %p869_p10 }
  0x83   : > { %582 = dma.done.wait (!%p400_p1), %s277_s27, 384  }
  0x84   : > { %584 = vsyncadd (!%p400_p1), %s277_s27, 4294966912  ;;  %s21_s14 = sadd.s32 1, %s607_s14   ;;  %s871_s9 = smov %s591_s10 }
  0x85   : > { %p18_p2 = scmp.ge.s32.totalorder %s21_s14, 4   ;;  %s872_s10 = smov %s595_s11 }
  0x86   : > { %s873_s11 = smov %s686_s23  ;;  %s874_s12 = smov %s603_s13 }
  0x87   : > { %s875_s13 = smov %s877_s17  ;;  %20 = sbr.rel (!%p18_p2) target bundleno = 8 (0x8), region = 92 }
  0x8e   :  { %282 = vsyncpa [#allocation3], 1 }
  0x8f   :  { %284 = vsyncpa [#allocation3 + $0x1], 1 }
  0x90   :  { %285 = vsyncpa [#allocation6], 1 }
  0x91   :  { %287 = vsyncpa [#allocation6 + $0x1], 1 }
  0x92   :  { %288 = vsyncpa [#allocation4], 1 }
  0x93   :  { %290 = vsyncpa [#allocation4 + $0x1], 1 }

</bundles_post_ra>
